<compile_context>
chip_gen: v7x
topology: tpu7x:2x2x1
jax: 0.10.0
libtpu: 0.0.40
codegen_flags: <defaults>
</compile_context>

<pallas_src>
import jax
import jax.numpy as jnp
from jax.experimental import pallas as pl
from jax.experimental.pallas import tpu as pltpu

MIN_VALUE = 0.0458625
MAX_VALUE = 4.586176133204674
_INV_SQRT2 = 0.7071067811865476   # hoisted constant for exact-erf GELU

_TARGET_LANES = 65536        # f32 lanes per grid step (~8 MiB double-buffered in+out)
_MAX_BATCH_PER_BLOCK = 16    # bound on the static in-kernel batch unroll
_MIN_SPLIT_LANES = 8192      # only force a 2-way split (v7x megacore) above this


def _round_up(x, m):
    return ((x + m - 1) // m) * m


def _cdiv(a, b):
    return (a + b - 1) // b


def _fused_kernel(x_ref, w_ref, b_ref, o_ref):
    # x_ref: (BN, Cin, TILE_P)   w_ref: (Cout, Cin)   b_ref: (Cout, 1)
    # o_ref: (BN, Cout, TILE_P)
    w = w_ref[...]
    b = b_ref[...]
    for i in range(x_ref.shape[0]):   # static unroll over the batches in this block
        # K=3 contraction on the otherwise-idle MXU (frees VALU for the erf GELU).
        y = jnp.dot(w, x_ref[i],
                    preferred_element_type=jnp.float32,
                    precision=jax.lax.Precision.HIGHEST) + b
        # torch.clamp_min then torch.clamp_max == clip.
        y = jnp.clip(y, MIN_VALUE, MAX_VALUE)
        # Exact GELU (PyTorch default, approximate='none'); erf runs on the EUP.
        o_ref[i] = 0.5 * y * (1.0 + jax.lax.erf(y * _INV_SQRT2))


def model_forward(x_nchw, weight_convt, bias):
    """Forward pass of the fused module.

    x_nchw:       (N, 3, H, W) float32
    weight_convt: PyTorch ConvTranspose2d weight, shape (Cin, Cout, 1, 1)
    bias:         (Cout,) float32

    Returns (N, Cout, H-2, W-2) float32, matching
    GELU(clip(ConvTranspose2d(3, 8, 1, stride=1, padding=1)(x), min, max)).
    """
    n, cin, h, w = x_nchw.shape
    cout = weight_convt.shape[1]
    hc, wc = h - 2, w - 2              # k=1, s=1, p=1 crops 1 pixel per side
    assert hc > 0 and wc > 0, "spatial dims must be > 2"
    p = hc * wc

    # Weight to the (Cout, Cin) form the kernel consumes; bias to (Cout, 1).
    w_oc_ic = jnp.transpose(weight_convt.reshape(cin, cout), (1, 0))
    b_oc1 = bias.reshape(cout, 1)

    # Crop the border and flatten pixels onto the lane axis (single fused
    # slice+reshape copy; channels stay on sublanes, no transposes).
    x_flat = x_nchw[:, :, 1:h - 1, 1:w - 1].reshape(n, cin, p)

    # ---- tile sizing -------------------------------------------------------
    p_pad = _round_up(p, 128)
    # Fold batch into the block so small images still move full-size slabs.
    bn = max(1, min(n, _TARGET_LANES // p_pad, _MAX_BATCH_PER_BLOCK))
    grid_b = _cdiv(n, bn)
    # Balanced pixel tiling (avoid a mostly-padding tail tile).
    n_ptiles = _cdiv(p_pad, max(128, _TARGET_LANES // bn))
    # Keep both v7x TensorCores busy if the whole problem would be one step.
    if grid_b * n_ptiles == 1 and bn * p_pad >= _MIN_SPLIT_LANES:
        n_ptiles = 2
    if n_ptiles == 1:
        tile_p = p                       # full dim: exempt from 128-divisibility
    else:
        tile_p = _round_up(_cdiv(p, n_ptiles), 128)
    grid = (grid_b, _cdiv(p, tile_p))

    out_flat = pl.pallas_call(
        _fused_kernel,
        out_shape=jax.ShapeDtypeStruct((n, cout, p), jnp.float32),
        grid=grid,
        in_specs=[
            pl.BlockSpec((bn, cin, tile_p), lambda bi, pi: (bi, 0, pi)),
            pl.BlockSpec((cout, cin), lambda bi, pi: (0, 0)),   # resident weight
            pl.BlockSpec((cout, 1), lambda bi, pi: (0, 0)),     # resident bias
        ],
        out_specs=pl.BlockSpec((bn, cout, tile_p), lambda bi, pi: (bi, 0, pi)),
        compiler_params=pltpu.CompilerParams(
            dimension_semantics=("parallel", "parallel"),
            vmem_limit_bytes=32 * 1024 * 1024,
        ),
    )(x_flat, w_oc_ic, b_oc1)

    # Free reshape back to NCHW (no transpose needed).
    return out_flat.reshape(n, cout, hc, wc)


if __name__ == "__main__":
    key = jax.random.PRNGKey(0)
    kx, kw, kb = jax.random.split(key, 3)

    # Small shapes consistent with the module: Cin must be 3, Cout = 8.
    N, CIN, H, W = 2, 3, 16, 16
    COUT = 8

    x = jax.random.normal(kx, (N, CIN, H, W), dtype=jnp.float32)

    # Native PyTorch ConvTranspose2d weight layout: (in_channels, out_channels, 1, 1).
    bound = 1.0 / jnp.sqrt(jnp.float32(CIN))
    weight = jax.random.uniform(kw, (CIN, COUT, 1, 1), jnp.float32, -bound, bound)
    bias = jax.random.uniform(kb, (COUT,), jnp.float32, -bound, bound)

    out = model_forward(x, weight, bias)
    jax.block_until_ready(out)

    assert out.shape == (N, COUT, H - 2, W - 2), out.shape
    assert out.dtype == jnp.float32

    # Pure-JAX reference check (exact-precision contraction).
    w2d = weight.reshape(CIN, COUT).T                      # (Cout, Cin)
    xc = x[:, :, 1:H - 1, 1:W - 1]
    ref = jnp.einsum("oc,bchw->bohw", w2d, xc,
                     precision=jax.lax.Precision.HIGHEST) + bias.reshape(1, COUT, 1, 1)
    ref = jnp.clip(ref, MIN_VALUE, MAX_VALUE)
    ref = 0.5 * ref * (1.0 + jax.lax.erf(ref * _INV_SQRT2))
    assert jnp.allclose(out, ref, atol=1e-4, rtol=1e-4), float(
        jnp.max(jnp.abs(out - ref)))

    print("KERNEL_OK")
</pallas_src>

<mosaic_0001>
module attributes {stable_mosaic.version = 11 : i64} {
  func.func @_fused_kernel(%arg0: i32, %arg1: i32, %arg2: memref<2x3x196xf32, #tpu.memory_space<vmem>>, %arg3: memref<8x3xf32, #tpu.memory_space<vmem>>, %arg4: memref<8x1xf32, #tpu.memory_space<vmem>>, %arg5: memref<2x8x196xf32, #tpu.memory_space<vmem>>) attributes {dimension_semantics = [#tpu.dimension_semantics<parallel>, #tpu.dimension_semantics<parallel>], iteration_bounds = array<i64: 1, 1>, scalar_prefetch = 0 : i64, scratch_operands = 0 : i64, tpu.core_type = #tpu.core_type<tc>, window_params = [{transform_indices = @transform_0, window_bounds = array<i64: 2, 3, 196>}, {pipeline_mode = #tpu.pipeline_mode<synchronous>, transform_indices = @transform_1, window_bounds = array<i64: 8, 3>}, {pipeline_mode = #tpu.pipeline_mode<synchronous>, transform_indices = @transform_2, window_bounds = array<i64: 8, 1>}, {transform_indices = @transform_3, window_bounds = array<i64: 2, 8, 196>}]} {
    %c0 = arith.constant 0 : index
    %c0_0 = arith.constant 0 : index
    %0 = vector.load %arg3[%c0, %c0_0] : memref<8x3xf32, #tpu.memory_space<vmem>>, vector<8x3xf32>
    %c0_1 = arith.constant 0 : index
    %c0_2 = arith.constant 0 : index
    %1 = vector.load %arg4[%c0_1, %c0_2] : memref<8x1xf32, #tpu.memory_space<vmem>>, vector<8x1xf32>
    %c0_3 = arith.constant 0 : index
    %c0_4 = arith.constant 0 : index
    %c0_5 = arith.constant 0 : index
    %2 = vector.load %arg2[%c0_3, %c0_4, %c0_5] : memref<2x3x196xf32, #tpu.memory_space<vmem>>, vector<1x3x196xf32>
    %3 = vector.shape_cast %2 : vector<1x3x196xf32> to vector<3x196xf32>
    %cst = arith.constant dense<0.000000e+00> : vector<8x196xf32>
    %4 = tpu.matmul %0, %3, %cst {dimension_numbers = #tpu.dot_dimension_numbers<[1], [0], [0], [1], [0, 0, 1, 1], [], []>, precision = #tpu.contract_precision<fp32>} : vector<8x3xf32>, vector<3x196xf32>, vector<8x196xf32> -> vector<8x196xf32>
    %5 = vector.broadcast %1 : vector<8x1xf32> to vector<8x196xf32>
    %6 = arith.addf %4, %5 : vector<8x196xf32>
    %cst_6 = arith.constant 4.586250e-02 : f32
    %cst_7 = arith.constant 4.58617592 : f32
    %7 = vector.broadcast %cst_6 : f32 to vector<8x196xf32>
    %8 = arith.maximumf %7, %6 : vector<8x196xf32>
    %9 = vector.broadcast %cst_7 : f32 to vector<8x196xf32>
    %10 = arith.minimumf %9, %8 : vector<8x196xf32>
    %cst_8 = arith.constant 5.000000e-01 : f32
    %11 = vector.broadcast %cst_8 : f32 to vector<8x196xf32>
    %12 = arith.mulf %11, %10 : vector<8x196xf32>
    %cst_9 = arith.constant 0.707106769 : f32
    %13 = vector.broadcast %cst_9 : f32 to vector<8x196xf32>
    %14 = arith.mulf %10, %13 : vector<8x196xf32>
    %15 = math.erf %14 : vector<8x196xf32>
    %cst_10 = arith.constant 1.000000e+00 : f32
    %16 = vector.broadcast %cst_10 : f32 to vector<8x196xf32>
    %17 = arith.addf %16, %15 : vector<8x196xf32>
    %18 = arith.mulf %12, %17 : vector<8x196xf32>
    %c0_11 = arith.constant 0 : index
    %c0_12 = arith.constant 0 : index
    %c0_13 = arith.constant 0 : index
    %19 = vector.load %arg5[%c0_11, %c0_12, %c0_13] : memref<2x8x196xf32, #tpu.memory_space<vmem>>, vector<1x8x196xf32>
    %20 = vector.shape_cast %19 : vector<1x8x196xf32> to vector<8x196xf32>
    %21 = vector.shape_cast %18 : vector<8x196xf32> to vector<1x8x196xf32>
    tpu.vector_store %arg5[%c0_11, %c0_12, %c0_13], %21 {strides = array<i32>} : memref<2x8x196xf32, #tpu.memory_space<vmem>>, vector<1x8x196xf32>,
    %c1 = arith.constant 1 : index
    %c0_14 = arith.constant 0 : index
    %c0_15 = arith.constant 0 : index
    %22 = vector.load %arg2[%c1, %c0_14, %c0_15] : memref<2x3x196xf32, #tpu.memory_space<vmem>>, vector<1x3x196xf32>
    %23 = vector.shape_cast %22 : vector<1x3x196xf32> to vector<3x196xf32>
    %cst_16 = arith.constant dense<0.000000e+00> : vector<8x196xf32>
    %24 = tpu.matmul %0, %23, %cst_16 {dimension_numbers = #tpu.dot_dimension_numbers<[1], [0], [0], [1], [0, 0, 1, 1], [], []>, precision = #tpu.contract_precision<fp32>} : vector<8x3xf32>, vector<3x196xf32>, vector<8x196xf32> -> vector<8x196xf32>
    %25 = vector.broadcast %1 : vector<8x1xf32> to vector<8x196xf32>
    %26 = arith.addf %24, %25 : vector<8x196xf32>
    %cst_17 = arith.constant 4.586250e-02 : f32
    %cst_18 = arith.constant 4.58617592 : f32
    %27 = vector.broadcast %cst_17 : f32 to vector<8x196xf32>
    %28 = arith.maximumf %27, %26 : vector<8x196xf32>
    %29 = vector.broadcast %cst_18 : f32 to vector<8x196xf32>
    %30 = arith.minimumf %29, %28 : vector<8x196xf32>
    %cst_19 = arith.constant 5.000000e-01 : f32
    %31 = vector.broadcast %cst_19 : f32 to vector<8x196xf32>
    %32 = arith.mulf %31, %30 : vector<8x196xf32>
    %cst_20 = arith.constant 0.707106769 : f32
    %33 = vector.broadcast %cst_20 : f32 to vector<8x196xf32>
    %34 = arith.mulf %30, %33 : vector<8x196xf32>
    %35 = math.erf %34 : vector<8x196xf32>
    %cst_21 = arith.constant 1.000000e+00 : f32
    %36 = vector.broadcast %cst_21 : f32 to vector<8x196xf32>
    %37 = arith.addf %36, %35 : vector<8x196xf32>
    %38 = arith.mulf %32, %37 : vector<8x196xf32>
    %c1_22 = arith.constant 1 : index
    %c0_23 = arith.constant 0 : index
    %c0_24 = arith.constant 0 : index
    %39 = vector.load %arg5[%c1_22, %c0_23, %c0_24] : memref<2x8x196xf32, #tpu.memory_space<vmem>>, vector<1x8x196xf32>
    %40 = vector.shape_cast %39 : vector<1x8x196xf32> to vector<8x196xf32>
    %41 = vector.shape_cast %38 : vector<8x196xf32> to vector<1x8x196xf32>
    tpu.vector_store %arg5[%c1_22, %c0_23, %c0_24], %41 {strides = array<i32>} : memref<2x8x196xf32, #tpu.memory_space<vmem>>, vector<1x8x196xf32>,
    return
  }
  func.func @transform_0(%arg0: i32, %arg1: i32) -> (i32, i32, i32) {
    %c0_i32 = arith.constant 0 : i32
    %c0_i32_0 = arith.constant 0 : i32
    return %arg0, %c0_i32, %arg1 : i32, i32, i32
  }
  func.func @transform_1(%arg0: i32, %arg1: i32) -> (i32, i32) {
    %c0_i32 = arith.constant 0 : i32
    %c0_i32_0 = arith.constant 0 : i32
    %c0_i32_1 = arith.constant 0 : i32
    return %c0_i32, %c0_i32_0 : i32, i32
  }
  func.func @transform_2(%arg0: i32, %arg1: i32) -> (i32, i32) {
    %c0_i32 = arith.constant 0 : i32
    %c0_i32_0 = arith.constant 0 : i32
    %c0_i32_1 = arith.constant 0 : i32
    return %c0_i32, %c0_i32_0 : i32, i32
  }
  func.func @transform_3(%arg0: i32, %arg1: i32) -> (i32, i32, i32) {
    %c0_i32 = arith.constant 0 : i32
    %c0_i32_0 = arith.constant 0 : i32
    return %arg0, %c0_i32, %arg1 : i32, i32, i32
  }
}

</mosaic_0001>

<bundles_post_ra>
// kernel: tpu_custom_call.1
= control target key start
LH: loop header
LB: loop body
LE: loop exit
PB: predicated region body
PF: predicated region fallthrough
CT: control target
= control target key end

     0   :  { %vm29_vm0 = vcmask 1042432   ;;  %v1087_v5 = vmov 0.0   ;;  %s1173_s0 = inlined_call_operand.vmem [shape: f32[2,3,196], index: 0, kind: input, shape index: {}]   ;;  %s1174_s1 = inlined_call_operand.vmem [shape: f32[8,3], index: 1, kind: input, shape index: {}]   ;;  %s1175_s2 = inlined_call_operand.vmem [shape: f32[8,1], index: 2, kind: input, shape index: {}]   ;;  %s1176_s3 = inlined_call_operand.hbm [shape: f32[2,8,196], index: 3, kind: output, shape index: {}]  }
   0x1   :  { %v17_v0 = vld [vmem:[%s1173_s0] sm:$0x77]  ;;  %v1022_v1 = vld [vmem:[%s1173_s0 + $0x8] sm:$0x77]  ;;  %100 = vmatprep.mubr.f32.mxu0 %v1087_v5  ;;  %590 = vmatprep.mubr.f32.mxu1 %v1087_v5 }
   0x2   :  { %v24_v2 = vcombine.high %v17_v0, %v17_v0  ;;  %v519_v3 = vcombine.high %v1022_v1, %v1022_v1  ;;  %v30_v4 = vsel %vm29_vm0, %v17_v0, 0  ;;  %v520_v6 = vsel %vm29_vm0, %v1022_v1, 0  ;;  %v15_v7 = vld [vmem:[%s1174_s1] sm:$0xff] }
   0x3   :  { %v16_v8 = vld [vmem:[%s1175_s2] sm:$0xff] }
   0x4   :  { %8 = vsyncpa [#allocation3], 0  ;;  %v1128_v9 = vand.u32 4294901760, %v30_v4  ;;  %v1130_v10 = vand.u32 4294901760, %v520_v6  ;;  %vm25_vm1 = vcmask 23552   ;;  %v32_v11 = vsel %vm29_vm0, %v24_v2, 0 }
   0x5   :  { %v522_v12 = vsel %vm29_vm0, %v519_v3, 0  ;;  %v27_v13 = vsel %vm25_vm1, %v15_v7, 0  ;;  %v1088_v14 = vmov 0   ;;  %v34_v15 = vand.u32 4294901760, %v32_v11  ;;  %s1089_s0 = smov [#allocation2]  }
   0x6   :  { %1052 = vset.pattern.permute.xlu0 %v1088_v14  ;;  %v524_v16 = vand.u32 4294901760, %v522_v12  ;;  %v119_v17 = vsub.f32 %v30_v4, %v1128_v9  ;;  %v609_v18 = vsub.f32 %v520_v6, %v1130_v10  ;;  %v1136_v19 = vand.u32 4294901760, %v27_v13  ;;  %s1011_s1 = sshll.u32 %s1089_s0, 4  ;;  %s1012_s1 = int_to_ptr.vmem [resolvable:$true] %s1011_s1 }
   0x7   :  { %20 = vperm.xlu0 %1052, %v16_v8   ;;  %35 = vmatprep.subr.mxu0 %v34_v15  ;;  %v113_v20 = vsub.f32 %v32_v11, %v34_v15  ;;  %vm514_vm2 = vcmask 556032   ;;  %s1063_s2 = scalar_lea.vmem %s1012_s1, 512  ;;  %p1068_p1 = scmp.lt.s32.totalorder %s1012_s1, %s1012_s1 }
   0x8   :  { %525 = vmatprep.subr.mxu1 %v524_v16  ;;  %v603_v21 = vsub.f32 %v522_v12, %v524_v16  ;;  %v120_v22 = vand.u32 4294901760, %v119_v17  ;;  %v610_v23 = vand.u32 4294901760, %v609_v18  ;;  %37 = vmatpush1.msra.mxu0 %v1128_v9  ;;  %v102_v24 = vsub.f32 %v27_v13, %v1136_v19  ;;  %p1064_p0 = scmp.ne.s32.totalorder %s1012_s1, %s1063_s2  ;;  %p1069_p2 = scmp.lt.s32.totalorder %s1063_s2, %s1063_s2 }
   0x9   :  { %527 = vmatpush1.msra.mxu1 %v1130_v10  ;;  %v114_v25 = vand.u32 4294901760, %v113_v20 }
   0xa   :  { %v604_v26 = vand.u32 4294901760, %v603_v21  ;;  %v121_v27 = vsub.f32 %v119_v17, %v120_v22  ;;  %v611_v28 = vsub.f32 %v609_v18, %v610_v23  ;;  %v103_v29 = vand.u32 4294901760, %v102_v24  ;;  %p1070_p3 = por %p1069_p2, %p1068_p1 }
   0xb   :  { %v115_v30 = vsub.f32 %v113_v20, %v114_v25 }
   0xc   :  { %v605_v31 = vsub.f32 %v603_v21, %v604_v26  ;;  %v104_v32 = vsub.f32 %v102_v24, %v103_v29  ;;  %v122_v35 = vand.u32 4294901760, %v121_v27  ;;  %v612_v36 = vand.u32 4294901760, %v611_v28  ;;  %p1071_p4 = pnand %p1070_p3, %p1064_p0 }
   0xd   :  { %v116_v33 = vand.u32 4294901760, %v115_v30 }
   0xe   :  { %v606_v34 = vand.u32 4294901760, %v605_v31  ;;  %v105_v37 = vand.u32 4294901760, %v104_v32 }
   0xf   :  { %117 = vmatprep.subr.mxu0 %v116_v33 }
  0x10   :  { %607 = vmatprep.subr.mxu1 %v606_v34  ;;  %106 = vmatmul.mubr.f32.vlgmr.msra.gmra.mrb[0].mxu0 %v105_v37 }
  0x11   :  { %596 = vmatmul.mubr.f32.vlgmr.msra.gmra.mrb[0].mxu1 %v105_v37  ;;  %123 = vmatpush1.msra.mxu0 %v122_v35 }
  0x12   :  { %613 = vmatpush1.msra.mxu1 %v612_v36  ;;  %186 = vmatprep.mubr.f32.mxu0 %v1087_v5 }
  0x13   :  { %676 = vmatprep.mubr.f32.mxu1 %v1087_v5  ;;  %196 = vmatprep.subr.mxu0 %v113_v20 }
  0x14   :  { %686 = vmatprep.subr.mxu1 %v603_v21 }
  0x18   :  { %188 = vmatmul.mubr.f32.vlgmr.msra.gmra.mrb[0].mxu0 %v1136_v19 }
  0x19   :  { %678 = vmatmul.mubr.f32.vlgmr.msra.gmra.mrb[0].mxu1 %v1136_v19  ;;  %199 = vmatpush1.msra.mxu0 %v119_v17 }
  0x1a   :  { %689 = vmatpush1.msra.mxu1 %v609_v18  ;;  %262 = vmatprep.mubr.f32.mxu0 %v1087_v5 }
  0x1b   :  { %752 = vmatprep.mubr.f32.mxu1 %v1087_v5  ;;  %272 = vmatprep.subr.mxu0 %v34_v15 }
  0x1c   :  { %762 = vmatprep.subr.mxu1 %v524_v16 }
  0x20   :  { %265 = vmatmul.mubr.f32.vlgmr.msra.gmra.mrb[0].mxu0 %v102_v24 }
  0x21   :  { %755 = vmatmul.mubr.f32.vlgmr.msra.gmra.mrb[0].mxu1 %v102_v24  ;;  %274 = vmatpush1.msra.mxu0 %v1128_v9 }
  0x22   :  { %764 = vmatpush1.msra.mxu1 %v1130_v10  ;;  %337 = vmatprep.mubr.f32.mxu0 %v1087_v5 }
  0x23   :  { %827 = vmatprep.mubr.f32.mxu1 %v1087_v5  ;;  %350 = vmatprep.subr.mxu0 %v114_v25 }
  0x24   :  { %840 = vmatprep.subr.mxu1 %v604_v26 }
  0x28   :  { %341 = vmatmul.mubr.f32.vlgmr.msra.gmra.mrb[0].mxu0 %v103_v29 }
  0x29   :  { %831 = vmatmul.mubr.f32.vlgmr.msra.gmra.mrb[0].mxu1 %v103_v29  ;;  %354 = vmatpush1.msra.mxu0 %v120_v22 }
  0x2a   :  { %844 = vmatpush1.msra.mxu1 %v610_v23  ;;  %417 = vmatprep.mubr.f32.mxu0 %v1087_v5 }
  0x2b   :  { %907 = vmatprep.mubr.f32.mxu1 %v1087_v5  ;;  %426 = vmatprep.subr.mxu0 %v34_v15 }
  0x2c   :  { %916 = vmatprep.subr.mxu1 %v524_v16 }
  0x30   :  { %419 = vmatmul.mubr.f32.vlgmr.msra.gmra.mrb[0].mxu0 %v1136_v19 }
  0x31   :  { %909 = vmatmul.mubr.f32.vlgmr.msra.gmra.mrb[0].mxu1 %v1136_v19  ;;  %428 = vmatpush1.msra.mxu0 %v1128_v9 }
  0x32   :  { %918 = vmatpush1.msra.mxu1 %v1130_v10  ;;  %491 = vmatprep.mubr.f32.mxu0 %v1087_v5 }
  0x33   :  { %981 = vmatprep.mubr.f32.mxu1 %v1087_v5 }
  0x38   :  { %493 = vmatmul.mubr.f32.vlgmr.msra.gmra.mrb[0].mxu0 %v1136_v19 }
  0x39   :  { %983 = vmatmul.mubr.f32.vlgmr.msra.gmra.mrb[0].mxu1 %v1136_v19 }
  0x86   :  { %v21_v38 = vpop.permute.xlu0 %20 }
 0x10b   :  { %v494_v39 = vpop.f32.mrb[0].mxu0 }
 0x10c   :  { %v984_v40 = vpop.f32.mrb[0].mxu1  ;;  %v1023_v41 = vadd.f32 %v494_v39, %v21_v38  ;;  %v496_v43 = vpop.f32.mrb[1].mxu0 }
 0x10d   :  { %v1025_v42 = vadd.f32 %v984_v40, %v21_v38  ;;  %v986_v44 = vpop.f32.mrb[1].mxu1  ;;  %v1024_v45 = vadd.f32 %v496_v43, %v21_v38 }
 0x10e   :  { %v1026_v46 = vadd.f32 %v986_v44, %v21_v38  ;;  %v499_v47 = vmax.f32 %v1023_v41, 0.0458625 }
 0x10f   :  { %v989_v48 = vmax.f32 %v1025_v42, 0.0458625  ;;  %v500_v49 = vmax.f32 %v1024_v45, 0.0458625 }
 0x110   :  { %v990_v50 = vmax.f32 %v1026_v46, 0.0458625  ;;  %v501_v51 = vmin.f32 %v499_v47, 4.586176 }
 0x111   :  { %v991_v52 = vmin.f32 %v989_v48, 4.586176  ;;  %v502_v53 = vmin.f32 %v500_v49, 4.586176 }
 0x112   :  { %v992_v54 = vmin.f32 %v990_v50, 4.586176  ;;  %v505_v55 = vmul.f32 0.70710677, %v501_v51  ;;  %v503_v61 = vmul.f32 0.5, %v501_v51 }
 0x113   :  { %v995_v56 = vmul.f32 0.70710677, %v991_v52  ;;  %v506_v57 = vmul.f32 0.70710677, %v502_v53  ;;  %v993_v0 = vmul.f32 0.5, %v991_v52  ;;  %v504_v4 = vmul.f32 0.5, %v502_v53 }
 0x114   :  { %v996_v58 = vmul.f32 0.70710677, %v992_v54  ;;  %1055 = verf.f32 %v505_v55  ;;  %v994_v7 = vmul.f32 0.5, %v992_v54 }
 0x115   :  { %1057 = verf.f32 %v995_v56 }
 0x116   :  { %1059 = verf.f32 %v506_v57 }
 0x117   :  { %1061 = verf.f32 %v996_v58 }
 0x11e   :  { %v1056_v59 = vpop.eup %1055 }
 0x11f   :  { %v1058_v60 = vpop.eup %1057  ;;  %v509_v62 = vadd.f32 1.0, %v1056_v59 }
 0x120   :  { %v1060_v63 = vpop.eup %1059  ;;  %v999_v1 = vadd.f32 1.0, %v1058_v60 }
 0x121   :  { %v1062_v2 = vpop.eup %1061  ;;  %v511_v3 = vmul.f32 %v509_v62, %v503_v61  ;;  %v510_v5 = vadd.f32 1.0, %v1060_v63 }
 0x122   :  { %v1001_v6 = vmul.f32 %v999_v1, %v993_v0  ;;  %v1000_v8 = vadd.f32 1.0, %v1062_v2 }
 0x123   :  { %513 = vst [vmem:[#allocation2] sm:$0xff] %v511_v3  ;;  %v512_v9 = vmul.f32 %v510_v5, %v504_v4 }
 0x124   :  { %1004 = vst [vmem:[#allocation2 + $0x10] sm:$0xff] %v1001_v6  ;;  %v1002_v10 = vmul.f32 %v1000_v8, %v994_v7 }
 0x125   :  { %515 = vst.msk [vmem:[#allocation2 + $0x8] sm:$0xff] %vm514_vm2, %v512_v9 }
 0x126   :  { %1005 = vst.msk [vmem:[#allocation2 + $0x18] sm:$0xff] %vm514_vm2, %v1002_v10 }
 0x127   :  { %1074 = shalt.err (!%p1071_p4)
}
 0x128   :  { %s1075_s22 = scalar_lea.hbm %s1176_s3, 512 }
 0x129   :  { %p1076_p5 = scmp.ne.s32.totalorder %s1176_s3, %s1075_s22  ;;  %p1079_p6 = scmp.lt.u32.totalorder %s1075_s22, %s1176_s3 }
 0x12b   :  { %p1081_p7 = pnand %p1079_p6, %p1076_p5 }
 0x12d   :  { %1084 = shalt.err (!%p1081_p7)
}
 0x12e   :  { %s1090_s27 = smov 256   ;;  %s1091_s28 = smov 16  }
 0x12f   :  { %1017 = dma.vmem_to_hbm [thread:$0]  %s1012_s1, 512, %s1176_s3, [#allocation3], %s1090_s27, %s1090_s27, %s1091_s28  }
 0x130   :  { %1085 = dma.done.wait [#allocation3], 512  }
 0x131   :  { %1086 = vsyncadd [#allocation3], 4294966784 }
 0x132   :  { %1021 = vsyncpa [#allocation3], 1 }

</bundles_post_ra>
